<compile_context>
chip_gen: v6e
topology: v6e:2x2x1
jax: 0.10.0
libtpu: 0.0.40
codegen_flags: <defaults>
</compile_context>

<pallas_src>
import functools

import numpy as np
import jax
import jax.numpy as jnp
from jax.experimental import pallas as pl
from jax.experimental.pallas import tpu as pltpu


# ----------------------------- Pallas kernel --------------------------------
def _shallow_convnet_kernel(patches_t_ref, w_t_ref, b_ref, pool_t_ref, out_ref,
                            *, n_batch, hw, ohw):
    # patches_t_ref: (K, M)         bf16, M = N*H*W (lane-dense im2col, batch folded)
    # w_t_ref:       (C_out, K)     bf16
    # b_ref:         (C_out, 1)     f32
    # pool_t_ref:    (HW, OHW)      f32 per-sample adaptive-avg-pool matrix
    # out_ref:       (C_out, N*OHW) f32
    conv_t = jnp.dot(w_t_ref[...], patches_t_ref[...],
                     preferred_element_type=jnp.float32)            # (C_out, M)
    conv_t = conv_t + b_ref[...]                                     # lane-broadcast bias
    pool_t = pool_t_ref[...]                                         # (HW, OHW)

    # Per-sample pooling: statically unrolled over the small batch. Lane slices
    # of conv_t start at multiples of HW (=256, 128-aligned).
    for n in range(n_batch):
        conv_n = conv_t[:, n * hw:(n + 1) * hw]                      # (C_out, HW)
        pooled_n = jnp.dot(conv_n, pool_t,
                           preferred_element_type=jnp.float32)       # (C_out, OHW)
        out_ref[:, n * ohw:(n + 1) * ohw] = pooled_n.astype(out_ref.dtype)


# ------------------------------ Glue (JAX) -----------------------------------
def _im2col_t(x, kh=3, kw=3, pad=1):
    """x: (N, C, H, W) -> (C*kh*kw, N*H*W); row index ordered as (c, ky, kx)."""
    N, C, H, W = x.shape
    xp = jnp.pad(x, ((0, 0), (0, 0), (pad, pad), (pad, pad)))
    taps = [xp[:, :, dy:dy + H, dx:dx + W]
            for dy in range(kh) for dx in range(kw)]                # each (N, C, H, W)
    taps = jnp.stack(taps, axis=0)                                  # (kh*kw, N, C, H, W)
    taps = taps.transpose(2, 0, 1, 3, 4)                            # (C, kh*kw, N, H, W)
    return taps.reshape(C * kh * kw, N * H * W)                     # (K, M)


def _adaptive_pool_matrix(in_size, out_size):
    """PyTorch AdaptiveAvgPool1d semantics as a (out_size, in_size) numpy matrix."""
    P = np.zeros((out_size, in_size), dtype=np.float32)
    for i in range(out_size):
        start = (i * in_size) // out_size
        end = -(-((i + 1) * in_size) // out_size)                   # ceil div
        P[i, start:end] = 1.0 / (end - start)
    return P


def shallow_convnet_forward(x, weight, bias, output_h, output_w):
    """x: (N, C_in, H, W); weight: (C_out, C_in, 3, 3); bias: (C_out,)."""
    N, C_in, H, W = x.shape
    C_out = weight.shape[0]
    HW = H * W
    OHW = output_h * output_w
    K = C_in * 9
    M = N * HW

    # bf16 operands for the conv matmul (f32 accumulation in-kernel).
    patches_t = _im2col_t(x).astype(jnp.bfloat16)                   # (K, M)
    w_t = weight.reshape(C_out, K).astype(jnp.bfloat16)             # (C_out, K)
    b_col = bias.reshape(C_out, 1).astype(jnp.float32)              # (C_out, 1)

    ph = _adaptive_pool_matrix(H, output_h)                         # (OH, H)
    pw = _adaptive_pool_matrix(W, output_w)                         # (OW, W)
    pool_t = jnp.asarray(np.kron(ph, pw).T.astype(np.float32))      # (HW, OHW)

    kernel = functools.partial(_shallow_convnet_kernel,
                               n_batch=N, hw=HW, ohw=OHW)

    out_flat = pl.pallas_call(
        kernel,
        out_shape=jax.ShapeDtypeStruct((C_out, N * OHW), jnp.float32),
        grid_spec=pltpu.PrefetchScalarGridSpec(
            num_scalar_prefetch=0,
            grid=(1,),                                              # single step: batch folded
            in_specs=[
                pl.BlockSpec((K, M), lambda i: (0, 0)),             # patches^T
                pl.BlockSpec((C_out, K), lambda i: (0, 0)),         # weight^T
                pl.BlockSpec((C_out, 1), lambda i: (0, 0)),         # bias column
                pl.BlockSpec((HW, OHW), lambda i: (0, 0)),          # per-sample pool matrix
            ],
            out_specs=pl.BlockSpec((C_out, N * OHW), lambda i: (0, 0)),
        ),
        compiler_params=pltpu.CompilerParams(
            dimension_semantics=("arbitrary",)),
    )(patches_t, w_t, b_col, pool_t)

    # (C_out, N*OH*OW) -> NCHW
    out = out_flat.reshape(C_out, N, output_h, output_w)
    return jnp.transpose(out, (1, 0, 2, 3))                         # (N, C_out, OH, OW)


# ------------------------------ Reference ------------------------------------
def _reference_forward(x, weight, bias, output_h, output_w):
    conv = jax.lax.conv_general_dilated(
        x, weight, window_strides=(1, 1), padding=((1, 1), (1, 1)),
        dimension_numbers=("NCHW", "OIHW", "NCHW"))
    conv = conv + bias.reshape(1, -1, 1, 1)
    ph = jnp.asarray(_adaptive_pool_matrix(x.shape[2], output_h))
    pw = jnp.asarray(_adaptive_pool_matrix(x.shape[3], output_w))
    t = jnp.einsum("oh,nchw->ncow", ph, conv)
    return jnp.einsum("pw,ncow->ncop", pw, t)


# --------------------------------- Main ---------------------------------------
if __name__ == "__main__":
    # ShallowConvNet(input_c=4, input_h=16, input_w=16,
    #                output_c=8, output_h=4, output_w=4), batch=2
    N, C_in, H, W = 2, 4, 16, 16
    C_out, OH, OW = 8, 4, 4

    key = jax.random.PRNGKey(0)
    kx, kw, kb = jax.random.split(key, 3)
    x = jax.random.normal(kx, (N, C_in, H, W), dtype=jnp.float32)
    # deterministic synthetic params (Conv2d weight (C_out, C_in, 3, 3), bias (C_out,))
    weight = jax.random.normal(kw, (C_out, C_in, 3, 3), dtype=jnp.float32) * 0.1
    bias = jax.random.normal(kb, (C_out,), dtype=jnp.float32) * 0.1

    out = shallow_convnet_forward(x, weight, bias, OH, OW)
    out = jax.block_until_ready(out)

    ref = _reference_forward(x, weight, bias, OH, OW)
    assert out.shape == (N, C_out, OH, OW), out.shape
    # bf16 conv operands (f32 accumulation) -> loosened tolerance
    np.testing.assert_allclose(np.asarray(out), np.asarray(ref),
                               rtol=2e-2, atol=3e-2)
    print("KERNEL_OK")
</pallas_src>

<mosaic_0001>
module attributes {stable_mosaic.version = 11 : i64} {
  func.func @_shallow_convnet_kernel(%arg0: i32, %arg1: memref<36x512xbf16, #tpu.memory_space<vmem>>, %arg2: memref<8x36xbf16, #tpu.memory_space<vmem>>, %arg3: memref<8x1xf32, #tpu.memory_space<vmem>>, %arg4: memref<256x16xf32, #tpu.memory_space<vmem>>, %arg5: memref<8x32xf32, #tpu.memory_space<vmem>>) attributes {dimension_semantics = [#tpu.dimension_semantics<arbitrary>], iteration_bounds = array<i64: 1>, scalar_prefetch = 0 : i64, scratch_operands = 0 : i64, tpu.core_type = #tpu.core_type<tc>, window_params = [{pipeline_mode = #tpu.pipeline_mode<synchronous>, transform_indices = @transform_0, window_bounds = array<i64: 36, 512>}, {pipeline_mode = #tpu.pipeline_mode<synchronous>, transform_indices = @transform_1, window_bounds = array<i64: 8, 36>}, {pipeline_mode = #tpu.pipeline_mode<synchronous>, transform_indices = @transform_2, window_bounds = array<i64: 8, 1>}, {pipeline_mode = #tpu.pipeline_mode<synchronous>, transform_indices = @transform_3, window_bounds = array<i64: 256, 16>}, {pipeline_mode = #tpu.pipeline_mode<synchronous>, transform_indices = @transform_4, window_bounds = array<i64: 8, 32>}]} {
    %c0 = arith.constant 0 : index
    %c0_0 = arith.constant 0 : index
    %0 = vector.load %arg2[%c0, %c0_0] : memref<8x36xbf16, #tpu.memory_space<vmem>>, vector<8x36xbf16>
    %c0_1 = arith.constant 0 : index
    %c0_2 = arith.constant 0 : index
    %1 = vector.load %arg1[%c0_1, %c0_2] : memref<36x512xbf16, #tpu.memory_space<vmem>>, vector<36x512xbf16>
    %cst = arith.constant dense<0.000000e+00> : vector<8x512xf32>
    %2 = tpu.matmul %0, %1, %cst {dimension_numbers = #tpu.dot_dimension_numbers<[1], [0], [0], [1], [0, 0, 1, 1], [], []>} : vector<8x36xbf16>, vector<36x512xbf16>, vector<8x512xf32> -> vector<8x512xf32>
    %c0_3 = arith.constant 0 : index
    %c0_4 = arith.constant 0 : index
    %3 = vector.load %arg3[%c0_3, %c0_4] : memref<8x1xf32, #tpu.memory_space<vmem>>, vector<8x1xf32>
    %4 = vector.broadcast %3 : vector<8x1xf32> to vector<8x512xf32>
    %5 = arith.addf %2, %4 : vector<8x512xf32>
    %c0_5 = arith.constant 0 : index
    %c0_6 = arith.constant 0 : index
    %6 = vector.load %arg4[%c0_5, %c0_6] : memref<256x16xf32, #tpu.memory_space<vmem>>, vector<256x16xf32>
    %7 = vector.extract_strided_slice %5 {offsets = [0, 0], sizes = [8, 256], strides = [1, 1]} : vector<8x512xf32> to vector<8x256xf32>
    %cst_7 = arith.constant dense<0.000000e+00> : vector<8x16xf32>
    %8 = tpu.matmul %7, %6, %cst_7 {dimension_numbers = #tpu.dot_dimension_numbers<[1], [0], [0], [1], [0, 0, 1, 1], [], []>} : vector<8x256xf32>, vector<256x16xf32>, vector<8x16xf32> -> vector<8x16xf32>
    %c0_8 = arith.constant 0 : index
    %c0_9 = arith.constant 0 : index
    %9 = vector.load %arg5[%c0_8, %c0_9] : memref<8x32xf32, #tpu.memory_space<vmem>>, vector<8x16xf32>
    tpu.vector_store %arg5[%c0_8, %c0_9], %8 {strides = array<i32>} : memref<8x32xf32, #tpu.memory_space<vmem>>, vector<8x16xf32>,
    %10 = vector.extract_strided_slice %5 {offsets = [0, 256], sizes = [8, 256], strides = [1, 1]} : vector<8x512xf32> to vector<8x256xf32>
    %cst_10 = arith.constant dense<0.000000e+00> : vector<8x16xf32>
    %11 = tpu.matmul %10, %6, %cst_10 {dimension_numbers = #tpu.dot_dimension_numbers<[1], [0], [0], [1], [0, 0, 1, 1], [], []>} : vector<8x256xf32>, vector<256x16xf32>, vector<8x16xf32> -> vector<8x16xf32>
    %c0_11 = arith.constant 0 : index
    %c16 = arith.constant 16 : index
    %12 = vector.load %arg5[%c0_11, %c16] : memref<8x32xf32, #tpu.memory_space<vmem>>, vector<8x16xf32>
    tpu.vector_store %arg5[%c0_11, %c16], %11 {strides = array<i32>} : memref<8x32xf32, #tpu.memory_space<vmem>>, vector<8x16xf32>,
    return
  }
  func.func @transform_0(%arg0: i32) -> (i32, i32) {
    %c0_i32 = arith.constant 0 : i32
    %c0_i32_0 = arith.constant 0 : i32
    %c0_i32_1 = arith.constant 0 : i32
    return %c0_i32, %c0_i32_0 : i32, i32
  }
  func.func @transform_1(%arg0: i32) -> (i32, i32) {
    %c0_i32 = arith.constant 0 : i32
    %c0_i32_0 = arith.constant 0 : i32
    %c0_i32_1 = arith.constant 0 : i32
    return %c0_i32, %c0_i32_0 : i32, i32
  }
  func.func @transform_2(%arg0: i32) -> (i32, i32) {
    %c0_i32 = arith.constant 0 : i32
    %c0_i32_0 = arith.constant 0 : i32
    %c0_i32_1 = arith.constant 0 : i32
    return %c0_i32, %c0_i32_0 : i32, i32
  }
  func.func @transform_3(%arg0: i32) -> (i32, i32) {
    %c0_i32 = arith.constant 0 : i32
    %c0_i32_0 = arith.constant 0 : i32
    %c0_i32_1 = arith.constant 0 : i32
    return %c0_i32, %c0_i32_0 : i32, i32
  }
  func.func @transform_4(%arg0: i32) -> (i32, i32) {
    %c0_i32 = arith.constant 0 : i32
    %c0_i32_0 = arith.constant 0 : i32
    %c0_i32_1 = arith.constant 0 : i32
    return %c0_i32, %c0_i32_0 : i32, i32
  }
}

</mosaic_0001>

<bundles_post_ra>
// kernel: tpu_custom_call.1
= control target key start
LH: loop header
LB: loop body
LE: loop exit
PB: predicated region body
PF: predicated region fallthrough
CT: control target
= control target key end

     0   :  { %vm90_vm0 = vcmask 1041408   ;;  %v507_v14 = vmov 0   ;;  %vm86_vm1 = vcmask 293888   ;;  %s670_s0 = inlined_call_operand.vmem [shape: bf16[36,512], index: 0, kind: input, shape index: {}]   ;;  %s671_s1 = inlined_call_operand.vmem [shape: bf16[8,36], index: 1, kind: input, shape index: {}]   ;;  %s672_s2 = inlined_call_operand.vmem [shape: f32[8,1], index: 2, kind: input, shape index: {}]   ;;  %s673_s3 = inlined_call_operand.vmem [shape: f32[256,16], index: 3, kind: input, shape index: {}]   ;;  %s674_s4 = inlined_call_operand.hbm [shape: f32[8,32], index: 4, kind: output, shape index: {}]  }
   0x1   :  { %v28_v0 = vld [vmem:[%s670_s0 + $0x40] sm:$0x33]  ;;  %v29_v1 = vld [vmem:[%s670_s0 + $0x48] sm:$0x33]  ;;  %135 = vmatprep.mubr.bf16.mxu0 %v507_v14  ;;  %176 = vmatprep.mubr.bf16.mxu1 %v507_v14  ;;  %v216_v18 = vld [vmem:[%s673_s3 + $0xf8] sm:$0xff] }
   0x2   :  { %v388_v2 = vcombine.high %v28_v0, %v28_v0  ;;  %v390_v3 = vcombine.high %v29_v1, %v29_v1  ;;  %v387_v4 = vcombine.low %v28_v0, %v28_v0  ;;  %v389_v5 = vcombine.low %v29_v1, %v29_v1  ;;  %v473_v6 = vld [vmem:[%s670_s0 + $0x24] ss:$16 sps:$4 sm:$0xff]   ;;  %v475_v7 = vld [vmem:[%s670_s0 + $0x2c] ss:$16 sps:$4 sm:$0xff]   ;;  %v477_v8 = vld [vmem:[%s670_s0 + $0x20] ss:$16 sps:$4 sm:$0xff]   ;;  %468 = vset.pattern.permute.xlu0 %v507_v14 }
   0x3   :  { %v478_v11 = vld [vmem:[%s670_s0 + $0x28] ss:$16 sps:$4 sm:$0xff]   ;;  %v479_v12 = vld [vmem:[%s670_s0 + $0x4] ss:$16 sps:$4 sm:$0xff]   ;;  %v481_v13 = vld [vmem:[%s670_s0 + $0xc] ss:$16 sps:$4 sm:$0xff]  }
   0x4   :  { %391 = vmatprep.subr.msk.bf16.mxu0 %vm90_vm0, %v388_v2  ;;  %393 = vmatprep.subr.msk.bf16.mxu1 %vm90_vm0, %v390_v3  ;;  %v92_v9 = vsel %vm90_vm0, %v387_v4, 0  ;;  %v98_v10 = vsel %vm90_vm0, %v389_v5, 0  ;;  %v30_v15 = vld [vmem:[%s672_s2] sm:$0xff]  ;;  %v484_v17 = vld [vmem:[%s670_s0 + $0x8] ss:$16 sps:$4 sm:$0xff]   ;;  %v215_v21 = vld [vmem:[%s673_s3 + $0xf0] sm:$0xff] }
   0x5   :  { %114 = vmatpush1.bf16.msra.mxu0 %v92_v9  ;;  %155 = vmatpush1.bf16.msra.mxu1 %v98_v10  ;;  %v483_v16 = vld [vmem:[%s670_s0] ss:$16 sps:$4 sm:$0xff]   ;;  %v200_v20 = vld [vmem:[%s673_s3 + $0x78] sm:$0xff] }
   0x6   :  { %115 = vmatprep.subr.bf16.mxu0 %v473_v6  ;;  %156 = vmatprep.subr.bf16.mxu1 %v475_v7  ;;  %v19_v19 = vld [vmem:[%s671_s1] sm:$0xf]  ;;  %v199_v22 = vld [vmem:[%s673_s3 + $0x70] sm:$0xff] }
   0x7   :  { %33 = vperm.xlu0 %468, %v30_v15  }
   0x9   :  { %116 = vmatpush1.bf16.msra.mxu0 %v477_v8  ;;  %157 = vmatpush1.bf16.msra.mxu1 %v478_v11 }
   0xa   :  { %117 = vmatprep.subr.bf16.mxu0 %v479_v12  ;;  %158 = vmatprep.subr.bf16.mxu1 %v481_v13 }
   0xd   :  { %118 = vmatpush1.bf16.msra.mxu0 %v483_v16  ;;  %159 = vmatpush1.bf16.msra.mxu1 %v484_v17 }
   0xe   :  { %395 = vmatprep.subr.mxu0 %v216_v18  ;;  %430 = vmatprep.subr.mxu1 %v216_v18 }
  0x10   :  { %392 = vmatmul.mubr.msk.bf16.vlgmr.msra.gmra.mxu0 %vm86_vm1, %v19_v19  ;;  %394 = vmatmul.mubr.msk.bf16.vlgmr.msra.gmra.mxu1 %vm86_vm1, %v19_v19 }
  0x11   :  { %9 = vsyncpa [#allocation3], 0  ;;  %396 = vmatpush3.msra.mxu0 %v200_v20  ;;  %431 = vmatpush3.msra.mxu1 %v200_v20  ;;  %v214_v23 = vld [vmem:[%s673_s3 + $0xe8] sm:$0xff]  ;;  %v213_v25 = vld [vmem:[%s673_s3 + $0xe0] sm:$0xff]  ;;  %vm287_vm2 = vcmask 130048   ;;  %s509_s17 = smov [#allocation2]  }
  0x12   :  { %397 = vmatprep.subr.mxu0 %v215_v21  ;;  %432 = vmatprep.subr.mxu1 %v215_v21  ;;  %v198_v24 = vld [vmem:[%s673_s3 + $0x68] sm:$0xff]  ;;  %v197_v26 = vld [vmem:[%s673_s3 + $0x60] sm:$0xff]  ;;  %v212_v27 = vld [vmem:[%s673_s3 + $0xd8] sm:$0xff]  ;;  %s371_s18 = sshll.u32 %s509_s17, 4  ;;  %vm363_vm3 = vcmask 261248   ;;  %s372_s18 = int_to_ptr.vmem [resolvable:$true] %s371_s18 }
  0x13   :  { %398 = vmatpush3.msra.mxu0 %v199_v22  ;;  %433 = vmatpush3.msra.mxu1 %v199_v22  ;;  %v196_v28 = vld [vmem:[%s673_s3 + $0x58] sm:$0xff]  ;;  %v211_v29 = vld [vmem:[%s673_s3 + $0xd0] sm:$0xff]  ;;  %v210_v31 = vld [vmem:[%s673_s3 + $0xc8] sm:$0xff]  ;;  %s485_s1 = scalar_lea.vmem %s372_s18, 128  ;;  %p490_p1 = scmp.lt.s32.totalorder %s372_s18, %s372_s18 }
  0x14   :  { %399 = vmatprep.subr.mxu0 %v214_v23  ;;  %434 = vmatprep.subr.mxu1 %v214_v23  ;;  %v195_v30 = vld [vmem:[%s673_s3 + $0x50] sm:$0xff]  ;;  %v194_v32 = vld [vmem:[%s673_s3 + $0x48] sm:$0xff]  ;;  %v209_v33 = vld [vmem:[%s673_s3 + $0xc0] sm:$0xff]  ;;  %p486_p0 = scmp.ne.s32.totalorder %s372_s18, %s485_s1  ;;  %p491_p2 = scmp.lt.s32.totalorder %s485_s1, %s485_s1 }
  0x15   :  { %400 = vmatpush3.msra.mxu0 %v198_v24  ;;  %435 = vmatpush3.msra.mxu1 %v198_v24  ;;  %v193_v34 = vld [vmem:[%s673_s3 + $0x40] sm:$0xff]  ;;  %v208_v35 = vld [vmem:[%s673_s3 + $0xb8] sm:$0xff]  ;;  %v207_v37 = vld [vmem:[%s673_s3 + $0xb0] sm:$0xff] }
  0x16   :  { %401 = vmatprep.subr.mxu0 %v213_v25  ;;  %436 = vmatprep.subr.mxu1 %v213_v25  ;;  %v192_v36 = vld [vmem:[%s673_s3 + $0x38] sm:$0xff]  ;;  %v191_v38 = vld [vmem:[%s673_s3 + $0x30] sm:$0xff]  ;;  %v206_v39 = vld [vmem:[%s673_s3 + $0xa8] sm:$0xff]  ;;  %p492_p3 = por %p491_p2, %p490_p1 }
  0x17   :  { %402 = vmatpush3.msra.mxu0 %v197_v26  ;;  %437 = vmatpush3.msra.mxu1 %v197_v26  ;;  %v190_v40 = vld [vmem:[%s673_s3 + $0x28] sm:$0xff]  ;;  %v205_v41 = vld [vmem:[%s673_s3 + $0xa0] sm:$0xff]  ;;  %v204_v43 = vld [vmem:[%s673_s3 + $0x98] sm:$0xff] }
  0x18   :  { %403 = vmatprep.subr.mxu0 %v212_v27  ;;  %438 = vmatprep.subr.mxu1 %v212_v27  ;;  %v189_v42 = vld [vmem:[%s673_s3 + $0x20] sm:$0xff]  ;;  %v188_v44 = vld [vmem:[%s673_s3 + $0x18] sm:$0xff]  ;;  %v203_v45 = vld [vmem:[%s673_s3 + $0x90] sm:$0xff]  ;;  %p493_p4 = pnand %p492_p3, %p486_p0 }
  0x19   :  { %404 = vmatpush3.msra.mxu0 %v196_v28  ;;  %439 = vmatpush3.msra.mxu1 %v196_v28  ;;  %v187_v46 = vld [vmem:[%s673_s3 + $0x10] sm:$0xff]  ;;  %v202_v47 = vld [vmem:[%s673_s3 + $0x88] sm:$0xff]  ;;  %v201_v49 = vld [vmem:[%s673_s3 + $0x80] sm:$0xff] }
  0x1a   :  { %405 = vmatprep.subr.mxu0 %v211_v29  ;;  %440 = vmatprep.subr.mxu1 %v211_v29  ;;  %v186_v48 = vld [vmem:[%s673_s3 + $0x8] sm:$0xff]  ;;  %v185_v50 = vld [vmem:[%s673_s3] sm:$0xff]  ;;  %s508_s3 = smov 16  }
  0x1b   :  { %406 = vmatpush3.msra.mxu0 %v195_v30  ;;  %441 = vmatpush3.msra.mxu1 %v195_v30 }
  0x1c   :  { %407 = vmatprep.subr.mxu0 %v210_v31  ;;  %442 = vmatprep.subr.mxu1 %v210_v31 }
  0x1d   :  { %408 = vmatpush3.msra.mxu0 %v194_v32  ;;  %443 = vmatpush3.msra.mxu1 %v194_v32 }
  0x1e   :  { %409 = vmatprep.subr.mxu0 %v209_v33  ;;  %444 = vmatprep.subr.mxu1 %v209_v33 }
  0x1f   :  { %410 = vmatpush3.msra.mxu0 %v193_v34  ;;  %445 = vmatpush3.msra.mxu1 %v193_v34 }
  0x20   :  { %411 = vmatprep.subr.mxu0 %v208_v35  ;;  %446 = vmatprep.subr.mxu1 %v208_v35 }
  0x21   :  { %412 = vmatpush3.msra.mxu0 %v192_v36  ;;  %447 = vmatpush3.msra.mxu1 %v192_v36 }
  0x22   :  { %413 = vmatprep.subr.mxu0 %v207_v37  ;;  %448 = vmatprep.subr.mxu1 %v207_v37 }
  0x23   :  { %414 = vmatpush3.msra.mxu0 %v191_v38  ;;  %449 = vmatpush3.msra.mxu1 %v191_v38 }
  0x24   :  { %415 = vmatprep.subr.mxu0 %v206_v39  ;;  %450 = vmatprep.subr.mxu1 %v206_v39 }
  0x25   :  { %416 = vmatpush3.msra.mxu0 %v190_v40  ;;  %451 = vmatpush3.msra.mxu1 %v190_v40 }
  0x26   :  { %417 = vmatprep.subr.mxu0 %v205_v41  ;;  %452 = vmatprep.subr.mxu1 %v205_v41 }
  0x27   :  { %418 = vmatpush3.msra.mxu0 %v189_v42  ;;  %453 = vmatpush3.msra.mxu1 %v189_v42 }
  0x28   :  { %419 = vmatprep.subr.mxu0 %v204_v43  ;;  %454 = vmatprep.subr.mxu1 %v204_v43 }
  0x29   :  { %420 = vmatpush3.msra.mxu0 %v188_v44  ;;  %455 = vmatpush3.msra.mxu1 %v188_v44 }
  0x2a   :  { %421 = vmatprep.subr.mxu0 %v203_v45  ;;  %456 = vmatprep.subr.mxu1 %v203_v45 }
  0x2b   :  { %422 = vmatpush3.msra.mxu0 %v187_v46  ;;  %457 = vmatpush3.msra.mxu1 %v187_v46 }
  0x2c   :  { %423 = vmatprep.subr.mxu0 %v202_v47  ;;  %458 = vmatprep.subr.mxu1 %v202_v47 }
  0x2d   :  { %424 = vmatpush3.msra.mxu0 %v186_v48  ;;  %459 = vmatpush3.msra.mxu1 %v186_v48 }
  0x2e   :  { %425 = vmatprep.subr.mxu0 %v201_v49  ;;  %460 = vmatprep.subr.mxu1 %v201_v49 }
  0x2f   :  { %426 = vmatpush3.msra.mxu0 %v185_v50  ;;  %461 = vmatpush3.msra.mxu1 %v185_v50 }
  0x82   :  { %v34_v53 = vpop.permute.xlu0 %33 }
  0xd0   :  { %v137_v51 = vpop.f32.mrf.mxu0  ;;  %v178_v52 = vpop.f32.mrf.mxu1 }
  0xd1   :  { %v138_v54 = vadd.f32 %v137_v51, %v34_v53  ;;  %v179_v59 = vadd.f32 %v178_v52, %v34_v53 }
  0xd2   :  { %v139_v55 = vpop.f32.mrf.mxu0  ;;  %v180_v56 = vpop.f32.mrf.mxu1 }
  0xd3   :  { %v140_v57 = vadd.f32 %v139_v55, %v34_v53  ;;  %v181_v58 = vadd.f32 %v180_v56, %v34_v53 }
  0xd4   :  { %v182_v60 = vpop.f32.mrf.mxu1  ;;  %v141_v61 = vpop.f32.mrf.mxu0 }
  0xd5   :  { %281 = vmatprep.mubr.f32.mxu0 %v140_v57  ;;  %353 = vmatprep.mubr.f32.mxu1 %v181_v58 }
  0xd6   :  { %v183_v62 = vpop.f32.mrf.mxu1  ;;  %282 = vmatmul.mubr.f32.vlgmr.msra.gmra.mxu0 %v138_v54  ;;  %354 = vmatmul.mubr.f32.vlgmr.msra.gmra.mxu1 %v179_v59  ;;  %v142_v63 = vpop.f32.mrf.mxu0 }
 0x196   :  { %v427_v0 = vpop.f32.mrf.mxu0  ;;  %v462_v1 = vpop.f32.mrf.mxu1 }
 0x198   :  { %v428_v2 = vpop.f32.mrf.mxu0  ;;  %v463_v3 = vpop.f32.mrf.mxu1 }
 0x199   :  { %v429_v4 = vadd.f32 %v428_v2, %v427_v0  ;;  %v464_v5 = vadd.f32 %v463_v3, %v462_v1 }
 0x19b   :  { %288 = vst.msk [vmem:[#allocation2] sm:$0xff] %vm287_vm2, %v429_v4  ;;  %360 = vrot.lane.b32.xlu0 %v464_v5, %s508_s3 }
 0x20d   :  { %v361_v6 = vpop.permute.xlu0 %360 }
 0x20e   :  { %364 = vst.msk [vmem:[#allocation2] sm:$0xff] %vm363_vm3, %v361_v6 }
 0x20f   :  { %496 = shalt.err (!%p493_p4)
}
 0x210   :  { %374 = dma.vmem_to_hbm [thread:$0]  %s372_s18, 128, %s674_s4, [#allocation3]  }
 0x211   :  { %505 = dma.done.wait [#allocation3], 128  }
 0x212   :  { %506 = vsyncadd [#allocation3], 4294967168 }
 0x213   :  { %378 = vsyncpa [#allocation3], 1 }

</bundles_post_ra>
